<compile_context>
chip_gen: v6e
topology: v6e:2x2x1
jax: 0.10.0
libtpu: 0.0.40
codegen_flags: <defaults>
</compile_context>

<pallas_src>
import functools

import jax
import jax.numpy as jnp
from jax import lax
from jax.experimental import pallas as pl
from jax.experimental.pallas import tpu as pltpu


def _round_up(x, m):
    return (x + m - 1) // m * m


def _is_megacore():
    # v7x has 2 TensorCores per chip; an even grid + ("parallel",) shards work.
    try:
        return "v7" in jax.devices()[0].device_kind.lower()
    except Exception:
        return False


_MEGACORE = _is_megacore()


def _choose_tiling(rows, max_rows_per_step):
    """Pick (tile_rows, grid_n): few big steps; even grid on megacore chips."""
    min_steps = 2 if (_MEGACORE and rows >= 16) else 1
    grid_n = max(min_steps, pl.cdiv(rows, max_rows_per_step))
    if _MEGACORE and grid_n > 1 and grid_n % 2:
        grid_n += 1
    if grid_n == 1:
        return rows, 1                      # single full block (no 8-mult needed)
    tile_rows = _round_up(pl.cdiv(rows, grid_n), 8)
    return tile_rows, pl.cdiv(rows, tile_rows)


# ---------------------------------------------------------------------------
# Kernels
# ---------------------------------------------------------------------------

def _packed_embed_kernel(labels_ref, table_ref, out_ref, *, pack, vp, num_valid):
    """Embed `pack` labels per 128-lane output row via a block-diagonal table.

    labels_ref: (tile_rows, pack) int32 VMEM
    table_ref : (pack*vp, 128)    table dtype, VMEM (resident every step)
    out_ref   : (tile_rows, 128)  table dtype, VMEM (lane-dense stores)
    """
    labels = labels_ref[...]                                 # (tile_rows, pack)
    tile_rows = labels.shape[0]
    k = table_ref.shape[0]                                   # pack * vp
    col = lax.broadcasted_iota(jnp.int32, (tile_rows, k), 1)
    onehot = jnp.zeros((tile_rows, k), dtype=jnp.float32)
    for p in range(pack):
        lab = labels[:, p:p + 1]                             # (tile_rows, 1)
        # Invalid (negative / out-of-range) labels -> no match -> zero row.
        valid = (lab >= 0) & (lab < num_valid)
        g = jnp.where(valid, lab + p * vp, -1)               # global column id
        onehot = onehot + (g == col).astype(jnp.float32)     # exact 0 / 1
    out = jnp.dot(onehot.astype(table_ref.dtype), table_ref[...],
                  preferred_element_type=jnp.float32)
    out_ref[...] = out.astype(out_ref.dtype)


def _padded_embed_kernel(labels_ref, table_ref, out_ref):
    """Fallback: one label per output row, H zero-padded to a multiple of 128.

    labels_ref: (tile_rows, 1) int32 VMEM
    table_ref : (Vp, Hp)       table dtype, VMEM (resident)
    out_ref   : (tile_rows, Hp) table dtype, VMEM
    """
    labels = labels_ref[...]                                 # (tile_rows, 1)
    tile_rows = labels.shape[0]
    vp = table_ref.shape[0]
    col = lax.broadcasted_iota(jnp.int32, (tile_rows, vp), 1)
    onehot = (labels == col).astype(table_ref.dtype)         # exact 0 / 1
    out = jnp.dot(onehot, table_ref[...], preferred_element_type=jnp.float32)
    out_ref[...] = out.astype(out_ref.dtype)


# ---------------------------------------------------------------------------
# Wrapper ("module")
# ---------------------------------------------------------------------------

class FuncTagEmbedder:
    """Pallas TPU port of FuncTagEmbedder: `embedding_table(labels)`.

    NOTE: out-of-range / negative labels produce an all-zero embedding row
    instead of raising like nn.Embedding would.
    """

    def __init__(self, num_classes, hidden_size, *, key=None, table=None,
                 dtype=jnp.float32):
        self.num_classes = num_classes
        self.hidden_size = hidden_size
        num_embeddings = num_classes + 1          # +1 row: CFG (null-label)
        if table is None:
            table = jax.random.normal(key, (num_embeddings, hidden_size),
                                      dtype=dtype)
        self.table = jnp.asarray(table)
        V, H = self.table.shape

        # ---- one-time table preparation (hoisted out of the hot path) ----
        if 128 % H == 0:
            # Packed mode: block-diagonal table, `pack` embeddings per
            # 128-lane output row -> lane-dense stores with zero H padding.
            self.mode = "packed"
            self.pack = 128 // H
            self.vp = _round_up(V, H)             # pack*vp is a multiple of 128
            k = self.pack * self.vp
            tbl = jnp.zeros((k, 128), dtype=self.table.dtype)
            for p in range(self.pack):
                tbl = tbl.at[p * self.vp:p * self.vp + V,
                             p * H:(p + 1) * H].set(self.table)
            self.table_prepared = tbl
        else:
            # Fallback: zero-pad H up to a lane-dense multiple of 128.
            self.mode = "padded"
            self.pack = 1
            self.vp = _round_up(V, 128)
            hp = _round_up(H, 128)
            self.table_prepared = (jnp.zeros((self.vp, hp), dtype=self.table.dtype)
                                   .at[:V, :H].set(self.table))

    def __call__(self, labels, *, max_rows_per_step=1024, force_pallas=False):
        V, H = self.table.shape
        orig_shape = labels.shape
        flat = jnp.asarray(labels).reshape(-1).astype(jnp.int32)
        N = int(flat.shape[0])

        # Tiny problems: XLA's fused gather beats kernel launch / step overhead.
        if not force_pallas and N * H < (1 << 18):
            return jnp.take(self.table, flat, axis=0).reshape(*orig_shape, H)

        if self.mode == "packed":
            out = self._packed_path(flat, N, max_rows_per_step)
        else:
            out = self._padded_path(flat, N, max_rows_per_step)
        return out.reshape(*orig_shape, H)

    # ---- packed (H divides 128) -------------------------------------------
    def _packed_path(self, flat, N, max_rows_per_step):
        V, H = self.table.shape
        pack, vp = self.pack, self.vp
        table_bd = self.table_prepared                       # (pack*vp, 128)
        k = table_bd.shape[0]

        n_pad = _round_up(N, pack)
        if n_pad != N:                                       # <= pack-1 elements
            flat = jnp.concatenate(
                [flat, jnp.zeros((n_pad - N,), dtype=jnp.int32)])
        rows = n_pad // pack
        labels2d = flat.reshape(rows, pack)

        tile_rows, grid_n = _choose_tiling(rows, max_rows_per_step)

        itemsize = jnp.dtype(table_bd.dtype).itemsize
        cost = pl.CostEstimate(
            flops=2 * rows * k * 128,
            transcendentals=0,
            bytes_accessed=(k * 128 * itemsize       # table (resident once)
                            + rows * pack * 4        # labels
                            + rows * 128 * itemsize),  # output
        )

        kernel = functools.partial(_packed_embed_kernel,
                                   pack=pack, vp=vp, num_valid=V)
        out = pl.pallas_call(
            kernel,
            out_shape=jax.ShapeDtypeStruct((rows, 128), table_bd.dtype),
            grid_spec=pltpu.PrefetchScalarGridSpec(
                num_scalar_prefetch=0,
                grid=(grid_n,),
                in_specs=[
                    pl.BlockSpec((tile_rows, pack), lambda i: (i, 0)),
                    # TODO(synk): for large V where this block-diagonal table
                    # no longer fits VMEM (esp. v7x's 64 MiB), switch to a
                    # scalar-prefetch row-gather kernel and set
                    # vmem_limit_bytes / Buffered(1) explicitly.
                    pl.BlockSpec((k, 128), lambda i: (0, 0)),
                ],
                out_specs=pl.BlockSpec((tile_rows, 128), lambda i: (i, 0)),
            ),
            compiler_params=pltpu.CompilerParams(
                dimension_semantics=("parallel",),
            ),
            cost_estimate=cost,
        )(labels2d, table_bd)

        # Pure layout reshape: (rows, 128) row-major == (rows*pack, H).
        out = out.reshape(n_pad, H)
        if n_pad != N:
            out = out[:N]
        return out

    # ---- fallback (H does not divide 128) ----------------------------------
    def _padded_path(self, flat, N, max_rows_per_step):
        V, H = self.table.shape
        table_p = self.table_prepared                        # (vp, hp)
        vp, hp = table_p.shape
        rows = N
        labels2d = flat.reshape(rows, 1)

        tile_rows, grid_n = _choose_tiling(rows, max_rows_per_step)

        itemsize = jnp.dtype(table_p.dtype).itemsize
        cost = pl.CostEstimate(
            flops=2 * rows * vp * hp,
            transcendentals=0,
            bytes_accessed=(vp * hp * itemsize
                            + rows * 4
                            + rows * hp * itemsize),
        )

        out = pl.pallas_call(
            _padded_embed_kernel,
            out_shape=jax.ShapeDtypeStruct((rows, hp), table_p.dtype),
            grid_spec=pltpu.PrefetchScalarGridSpec(
                num_scalar_prefetch=0,
                grid=(grid_n,),
                in_specs=[
                    pl.BlockSpec((tile_rows, 1), lambda i: (i, 0)),
                    pl.BlockSpec((vp, hp), lambda i: (0, 0)),
                ],
                out_specs=pl.BlockSpec((tile_rows, hp), lambda i: (i, 0)),
            ),
            compiler_params=pltpu.CompilerParams(
                dimension_semantics=("parallel",),
            ),
            cost_estimate=cost,
        )(labels2d, table_p)
        return out[:, :H]


if __name__ == "__main__":
    # FuncTagEmbedder(num_classes, hidden_size):
    #   embedding_table = nn.Embedding(num_classes + 1, hidden_size)
    num_classes = 10
    hidden_size = 32
    V = num_classes + 1

    key = jax.random.PRNGKey(0)
    k_table, k1, k2, k3 = jax.random.split(key, 4)

    emb = FuncTagEmbedder(num_classes, hidden_size, key=k_table)

    # 1) Small demo shape matching the module's (batch, seq) int labels.
    labels = jax.random.randint(k1, (2, 8), 0, V, dtype=jnp.int32)
    out = jax.block_until_ready(emb(labels, force_pallas=True))
    ref = jnp.take(emb.table, labels, axis=0)
    assert out.shape == (2, 8, hidden_size)
    assert jnp.allclose(out, ref, atol=1e-6), "mismatch vs reference (small)"

    # 2) Larger case: N=501 (not a multiple of pack=4), forced multi-step grid
    #    with a masked partial last block.
    labels2 = jax.random.randint(k2, (3, 167), 0, V, dtype=jnp.int32)
    out2 = jax.block_until_ready(
        emb(labels2, max_rows_per_step=64, force_pallas=True))
    ref2 = jnp.take(emb.table, labels2, axis=0)
    assert out2.shape == (3, 167, hidden_size)
    assert jnp.allclose(out2, ref2, atol=1e-6), "mismatch vs reference (large)"

    # 3) Fallback (padded-H) path for a hidden size that does not divide 128.
    emb3 = FuncTagEmbedder(num_classes, 40, key=k_table)
    labels3 = jax.random.randint(k3, (2, 8), 0, V, dtype=jnp.int32)
    out3 = jax.block_until_ready(emb3(labels3, force_pallas=True))
    ref3 = jnp.take(emb3.table, labels3, axis=0)
    assert out3.shape == (2, 8, 40)
    assert jnp.allclose(out3, ref3, atol=1e-6), "mismatch vs reference (fallback)"

    print("KERNEL_OK")
</pallas_src>

<mosaic_0001>
module attributes {stable_mosaic.version = 11 : i64} {
  func.func @_packed_embed_kernel(%arg0: i32, %arg1: memref<4x4xi32, #tpu.memory_space<vmem>>, %arg2: memref<128x128xf32, #tpu.memory_space<vmem>>, %arg3: memref<4x128xf32, #tpu.memory_space<vmem>>) attributes {dimension_semantics = [#tpu.dimension_semantics<parallel>], iteration_bounds = array<i64: 1>, scalar_prefetch = 0 : i64, scratch_operands = 0 : i64, tpu.core_type = #tpu.core_type<tc>, window_params = [{transform_indices = @transform_0, window_bounds = array<i64: 4, 4>}, {pipeline_mode = #tpu.pipeline_mode<synchronous>, transform_indices = @transform_1, window_bounds = array<i64: 128, 128>}, {transform_indices = @transform_2, window_bounds = array<i64: 4, 128>}]} {
    %c0 = arith.constant 0 : index
    %c0_0 = arith.constant 0 : index
    %0 = vector.load %arg1[%c0, %c0_0] : memref<4x4xi32, #tpu.memory_space<vmem>>, vector<4x4xi32>
    %1 = tpu.iota {dimensions = array<i32: 1>} : vector<4x128xi32>
    %cst = arith.constant 0.000000e+00 : f32
    %2 = vector.broadcast %cst : f32 to vector<4x128xf32>
    %3 = vector.extract_strided_slice %0 {offsets = [0, 0], sizes = [4, 1], strides = [1, 1]} : vector<4x4xi32> to vector<4x1xi32>
    %c0_i32 = arith.constant 0 : i32
    %4 = vector.broadcast %c0_i32 : i32 to vector<4x1xi32>
    %5 = arith.cmpi sge, %3, %4 : vector<4x1xi32>
    %c11_i32 = arith.constant 11 : i32
    %6 = vector.broadcast %c11_i32 : i32 to vector<4x1xi32>
    %7 = arith.cmpi slt, %3, %6 : vector<4x1xi32>
    %8 = arith.andi %5, %7 : vector<4x1xi1>
    %c0_i32_1 = arith.constant 0 : i32
    %9 = vector.broadcast %c0_i32_1 : i32 to vector<4x1xi32>
    %10 = arith.addi %3, %9 : vector<4x1xi32>
    %c-1_i32 = arith.constant -1 : i32
    %11 = vector.broadcast %c-1_i32 : i32 to vector<4x1xi32>
    %12 = arith.select %8, %10, %11 : vector<4x1xi1>, vector<4x1xi32>
    %13 = vector.broadcast %12 : vector<4x1xi32> to vector<4x128xi32>
    %14 = arith.cmpi eq, %13, %1 : vector<4x128xi32>
    %15 = arith.extui %14 : vector<4x128xi1> to vector<4x128xi32>
    %16 = arith.sitofp %15 : vector<4x128xi32> to vector<4x128xf32>
    %17 = arith.addf %2, %16 : vector<4x128xf32>
    %18 = vector.extract_strided_slice %0 {offsets = [0, 1], sizes = [4, 1], strides = [1, 1]} : vector<4x4xi32> to vector<4x1xi32>
    %c0_i32_2 = arith.constant 0 : i32
    %19 = vector.broadcast %c0_i32_2 : i32 to vector<4x1xi32>
    %20 = arith.cmpi sge, %18, %19 : vector<4x1xi32>
    %c11_i32_3 = arith.constant 11 : i32
    %21 = vector.broadcast %c11_i32_3 : i32 to vector<4x1xi32>
    %22 = arith.cmpi slt, %18, %21 : vector<4x1xi32>
    %23 = arith.andi %20, %22 : vector<4x1xi1>
    %c32_i32 = arith.constant 32 : i32
    %24 = vector.broadcast %c32_i32 : i32 to vector<4x1xi32>
    %25 = arith.addi %18, %24 : vector<4x1xi32>
    %c-1_i32_4 = arith.constant -1 : i32
    %26 = vector.broadcast %c-1_i32_4 : i32 to vector<4x1xi32>
    %27 = arith.select %23, %25, %26 : vector<4x1xi1>, vector<4x1xi32>
    %28 = vector.broadcast %27 : vector<4x1xi32> to vector<4x128xi32>
    %29 = arith.cmpi eq, %28, %1 : vector<4x128xi32>
    %30 = arith.extui %29 : vector<4x128xi1> to vector<4x128xi32>
    %31 = arith.sitofp %30 : vector<4x128xi32> to vector<4x128xf32>
    %32 = arith.addf %17, %31 : vector<4x128xf32>
    %33 = vector.extract_strided_slice %0 {offsets = [0, 2], sizes = [4, 1], strides = [1, 1]} : vector<4x4xi32> to vector<4x1xi32>
    %c0_i32_5 = arith.constant 0 : i32
    %34 = vector.broadcast %c0_i32_5 : i32 to vector<4x1xi32>
    %35 = arith.cmpi sge, %33, %34 : vector<4x1xi32>
    %c11_i32_6 = arith.constant 11 : i32
    %36 = vector.broadcast %c11_i32_6 : i32 to vector<4x1xi32>
    %37 = arith.cmpi slt, %33, %36 : vector<4x1xi32>
    %38 = arith.andi %35, %37 : vector<4x1xi1>
    %c64_i32 = arith.constant 64 : i32
    %39 = vector.broadcast %c64_i32 : i32 to vector<4x1xi32>
    %40 = arith.addi %33, %39 : vector<4x1xi32>
    %c-1_i32_7 = arith.constant -1 : i32
    %41 = vector.broadcast %c-1_i32_7 : i32 to vector<4x1xi32>
    %42 = arith.select %38, %40, %41 : vector<4x1xi1>, vector<4x1xi32>
    %43 = vector.broadcast %42 : vector<4x1xi32> to vector<4x128xi32>
    %44 = arith.cmpi eq, %43, %1 : vector<4x128xi32>
    %45 = arith.extui %44 : vector<4x128xi1> to vector<4x128xi32>
    %46 = arith.sitofp %45 : vector<4x128xi32> to vector<4x128xf32>
    %47 = arith.addf %32, %46 : vector<4x128xf32>
    %48 = vector.extract_strided_slice %0 {offsets = [0, 3], sizes = [4, 1], strides = [1, 1]} : vector<4x4xi32> to vector<4x1xi32>
    %c0_i32_8 = arith.constant 0 : i32
    %49 = vector.broadcast %c0_i32_8 : i32 to vector<4x1xi32>
    %50 = arith.cmpi sge, %48, %49 : vector<4x1xi32>
    %c11_i32_9 = arith.constant 11 : i32
    %51 = vector.broadcast %c11_i32_9 : i32 to vector<4x1xi32>
    %52 = arith.cmpi slt, %48, %51 : vector<4x1xi32>
    %53 = arith.andi %50, %52 : vector<4x1xi1>
    %c96_i32 = arith.constant 96 : i32
    %54 = vector.broadcast %c96_i32 : i32 to vector<4x1xi32>
    %55 = arith.addi %48, %54 : vector<4x1xi32>
    %c-1_i32_10 = arith.constant -1 : i32
    %56 = vector.broadcast %c-1_i32_10 : i32 to vector<4x1xi32>
    %57 = arith.select %53, %55, %56 : vector<4x1xi1>, vector<4x1xi32>
    %58 = vector.broadcast %57 : vector<4x1xi32> to vector<4x128xi32>
    %59 = arith.cmpi eq, %58, %1 : vector<4x128xi32>
    %60 = arith.extui %59 : vector<4x128xi1> to vector<4x128xi32>
    %61 = arith.sitofp %60 : vector<4x128xi32> to vector<4x128xf32>
    %62 = arith.addf %47, %61 : vector<4x128xf32>
    %c0_11 = arith.constant 0 : index
    %c0_12 = arith.constant 0 : index
    %63 = vector.load %arg2[%c0_11, %c0_12] : memref<128x128xf32, #tpu.memory_space<vmem>>, vector<128x128xf32>
    %cst_13 = arith.constant dense<0.000000e+00> : vector<4x128xf32>
    %64 = tpu.matmul %62, %63, %cst_13 {dimension_numbers = #tpu.dot_dimension_numbers<[1], [0], [0], [1], [0, 0, 1, 1], [], []>} : vector<4x128xf32>, vector<128x128xf32>, vector<4x128xf32> -> vector<4x128xf32>
    %c0_14 = arith.constant 0 : index
    %c0_15 = arith.constant 0 : index
    %65 = vector.load %arg3[%c0_14, %c0_15] : memref<4x128xf32, #tpu.memory_space<vmem>>, vector<4x128xf32>
    tpu.vector_store %arg3[%c0_14, %c0_15], %64 {strides = array<i32>} : memref<4x128xf32, #tpu.memory_space<vmem>>, vector<4x128xf32>,
    return
  }
  func.func @transform_0(%arg0: i32) -> (i32, i32) {
    %c0_i32 = arith.constant 0 : i32
    %c0_i32_0 = arith.constant 0 : i32
    return %arg0, %c0_i32 : i32, i32
  }
  func.func @transform_1(%arg0: i32) -> (i32, i32) {
    %c0_i32 = arith.constant 0 : i32
    %c0_i32_0 = arith.constant 0 : i32
    %c0_i32_1 = arith.constant 0 : i32
    return %c0_i32, %c0_i32_0 : i32, i32
  }
  func.func @transform_2(%arg0: i32) -> (i32, i32) {
    %c0_i32 = arith.constant 0 : i32
    %c0_i32_0 = arith.constant 0 : i32
    return %arg0, %c0_i32 : i32, i32
  }
}

</mosaic_0001>

<bundles_post_ra>
// kernel: tpu_custom_call.1
= control target key start
LH: loop header
LB: loop body
LE: loop exit
PB: predicated region body
PF: predicated region fallthrough
CT: control target
= control target key end

     0   :  { %7 = vsyncpa [#allocation3], 0  ;;  %s388_s0 = inlined_call_operand.hbm [shape: s32[4,4], index: 0, kind: input, shape index: {}]   ;;  %s389_s1 = inlined_call_operand.hbm [shape: f32[128,128], index: 1, kind: input, shape index: {}]   ;;  %s390_s2 = inlined_call_operand.hbm [shape: f32[4,128], index: 2, kind: output, shape index: {}]  }
   0x1   :  { %8 = vsyncpa [#allocation6], 0 }
   0x2   :  { %9 = vsyncpa [#allocation4], 0  ;;  %s320_s9 = smov [#allocation2]   ;;  %s321_s11 = smov [#allocation5]  }
   0x3   :  { %s16_s10 = sshll.u32 %s320_s9, 4  ;;  %s25_s12 = sshll.u32 %s321_s11, 4  ;;  %s17_s10 = int_to_ptr.vmem [resolvable:$true] %s16_s10  ;;  %s26_s12 = int_to_ptr.vmem [resolvable:$true] %s25_s12 }
   0x4   :  { %s262_s13 = scalar_lea.vmem %s17_s10, 64  ;;  %p267_p1 = scmp.lt.s32.totalorder %s17_s10, %s17_s10 }
   0x5   :  { %p263_p0 = scmp.ne.s32.totalorder %s17_s10, %s262_s13  ;;  %p268_p2 = scmp.lt.s32.totalorder %s262_s13, %s262_s13 }
   0x7   :  { %p269_p3 = por %p268_p2, %p267_p1 }
   0x9   :  { %p270_p4 = pnand %p269_p3, %p263_p0 }
   0xb   :  { %273 = shalt.err (!%p270_p4)
}
   0xc   :  { %19 = dma.hbm_to_vmem [thread:$0]  %s388_s0, 64, %s17_s10, [#allocation3]  }
   0xd   :  { %s282_s16 = scalar_lea.vmem %s26_s12, 2048  ;;  %p287_p6 = scmp.lt.s32.totalorder %s26_s12, %s26_s12 }
   0xe   :  { %p283_p5 = scmp.ne.s32.totalorder %s26_s12, %s282_s16  ;;  %p288_p7 = scmp.lt.s32.totalorder %s282_s16, %s282_s16 }
  0x10   :  { %p289_p8 = por %p288_p7, %p287_p6 }
  0x12   :  { %p290_p9 = pnand %p289_p8, %p283_p5 }
  0x14   :  { %293 = shalt.err (!%p290_p9)
}
  0x15   :  { %s322_s17 = smov 128   ;;  %s323_s18 = smov 8  }
  0x16   :  { %31 = dma.hbm_to_vmem [thread:$0]  %s389_s1, 2048, %s26_s12, [#allocation6], %s322_s17, %s322_s17, %s323_s18  }
  0x17   :  { %314 = dma.done.wait [#allocation3], 64  }
  0x18   :  { %315 = vsyncadd [#allocation3], 4294967232 }
  0x19   :  { %316 = dma.done.wait [#allocation6], 2048  }
  0x1a   :  { %317 = vsyncadd [#allocation6], 4294965248  ;;  %v324_v0 = vmov 0   ;;  %v325_v1 = vmov 2   ;;  %v326_v2 = vmov 0.0   ;;  %v94_v4 = vld [vmem:[#allocation5 + $0x78] sm:$0xff]  ;;  %v39_v30 = vlaneseq }
  0x1b   :  { %249 = vset.pattern.permute.xlu0 %v324_v0  ;;  %251 = vset.pattern.permute.xlu1 %v325_v1  ;;  %v38_v3 = vld [vmem:[#allocation2] sm:$0xf]  ;;  %v93_v5 = vld [vmem:[#allocation5 + $0x70] sm:$0xff]  ;;  %v92_v12 = vld [vmem:[#allocation5 + $0x68] sm:$0xff]  ;;  %v327_v16 = vmov 1   ;;  %v328_v17 = vmov 3  }
  0x1c   :  { %203 = vmatprep.subr.mxu0 %v326_v2  ;;  %vm41_vm0 = vcmp.ge.s32.totalorder %v38_v3, 0  ;;  %vm42_vm1 = vcmp.lt.s32.totalorder %v38_v3, 11  ;;  %v61_v6 = vadd.s32 64, %v38_v3  ;;  %v52_v8 = vadd.s32 32, %v38_v3  ;;  %v91_v15 = vld [vmem:[#allocation5 + $0x60] sm:$0xff]  ;;  %v90_v18 = vld [vmem:[#allocation5 + $0x58] sm:$0xff] }
  0x1d   :  { %204 = vmatpush3.msra.mxu0 %v94_v4  ;;  %vm353_vm2 = vmand %vm41_vm0, %vm42_vm1  ;;  %v70_v9 = vadd.s32 96, %v38_v3  ;;  %v89_v19 = vld [vmem:[#allocation5 + $0x50] sm:$0xff]  ;;  %vm329_vm3 = vmmov 0   ;;  %v88_v20 = vld [vmem:[#allocation5 + $0x48] sm:$0xff]  ;;  %v40_v31 = vand.u32 127, %v39_v30  ;;  %s330_s0 = smov [#allocation7]  }
  0x1e   :  { %205 = vmatprep.subr.mxu0 %v326_v2  ;;  %v44_v10 = vsel %vm353_vm2, %v38_v3, 4294967295  ;;  %v62_v11 = vsel %vm353_vm2, %v61_v6, 4294967295  ;;  %v53_v13 = vsel %vm353_vm2, %v52_v8, 4294967295  ;;  %235 = vmatprep.mubr.msk.f32.mxu0 %vm329_vm3, %v326_v2  ;;  %v87_v21 = vld [vmem:[#allocation5 + $0x40] sm:$0xff]  ;;  %v86_v22 = vld [vmem:[#allocation5 + $0x38] sm:$0xff]  ;;  %v85_v23 = vld [vmem:[#allocation5 + $0x30] sm:$0xff] }
  0x1f   :  { %206 = vmatpush3.msra.mxu0 %v93_v5  ;;  %46 = vperm.xlu0 %249, %v44_v10   ;;  %v71_v14 = vsel %vm353_vm2, %v70_v9, 4294967295  ;;  %v84_v24 = vld [vmem:[#allocation5 + $0x28] sm:$0xff]  ;;  %v83_v25 = vld [vmem:[#allocation5 + $0x20] sm:$0xff]  ;;  %v82_v26 = vld [vmem:[#allocation5 + $0x18] sm:$0xff]  ;;  %s172_s1 = sshll.u32 %s330_s0, 4  ;;  %s173_s1 = int_to_ptr.vmem [resolvable:$true] %s172_s1 }
  0x20   :  { %64 = vperm.xlu1 %251, %v62_v11   ;;  %207 = vmatprep.subr.mxu0 %v326_v2  ;;  %v81_v27 = vld [vmem:[#allocation5 + $0x10] sm:$0xff]  ;;  %v80_v28 = vld [vmem:[#allocation5 + $0x8] sm:$0xff]  ;;  %v79_v29 = vld [vmem:[#allocation5] sm:$0xff]  ;;  %s294_s21 = scalar_lea.vmem %s173_s1, 64  ;;  %p299_p11 = scmp.lt.s32.totalorder %s173_s1, %s173_s1 }
  0x21   :  { %208 = vmatpush3.msra.mxu0 %v92_v12  ;;  %p295_p10 = scmp.ne.s32.totalorder %s173_s1, %s294_s21  ;;  %p300_p12 = scmp.lt.s32.totalorder %s294_s21, %s294_s21 }
  0x22   :  { %209 = vmatprep.subr.mxu0 %v326_v2 }
  0x23   :  { %250 = vset.pattern.permute.xlu0 %v327_v16  ;;  %210 = vmatpush3.msra.mxu0 %v91_v15  ;;  %p301_p13 = por %p300_p12, %p299_p11 }
  0x24   :  { %252 = vset.pattern.permute.xlu1 %v328_v17  ;;  %55 = vperm.xlu0 %250, %v53_v13  }
  0x25   :  { %73 = vperm.xlu1 %252, %v71_v14   ;;  %211 = vmatprep.subr.mxu0 %v326_v2  ;;  %p302_p0 = pnand %p301_p13, %p295_p10 }
  0x26   :  { %212 = vmatpush3.msra.mxu0 %v90_v18 }
  0x27   :  { %213 = vmatprep.subr.mxu0 %v326_v2 }
  0x28   :  { %253 = vset.pattern.permute.xlu0 %v328_v17  ;;  %214 = vmatpush3.msra.mxu0 %v89_v19 }
  0x29   :  { %215 = vmatprep.subr.mxu0 %v326_v2 }
  0x2a   :  { %216 = vmatpush3.msra.mxu0 %v88_v20 }
  0x2b   :  { %217 = vmatprep.subr.mxu0 %v326_v2 }
  0x2c   :  { %218 = vmatpush3.msra.mxu0 %v87_v21 }
  0x2d   :  { %219 = vmatprep.subr.mxu0 %v326_v2 }
  0x2e   :  { %220 = vmatpush3.msra.mxu0 %v86_v22 }
  0x2f   :  { %221 = vmatprep.subr.mxu0 %v326_v2 }
  0x30   :  { %222 = vmatpush3.msra.mxu0 %v85_v23 }
  0x31   :  { %223 = vmatprep.subr.mxu0 %v326_v2 }
  0x32   :  { %224 = vmatpush3.msra.mxu0 %v84_v24 }
  0x33   :  { %225 = vmatprep.subr.mxu0 %v326_v2 }
  0x34   :  { %226 = vmatpush3.msra.mxu0 %v83_v25 }
  0x35   :  { %227 = vmatprep.subr.mxu0 %v326_v2 }
  0x36   :  { %228 = vmatpush3.msra.mxu0 %v82_v26 }
  0x37   :  { %229 = vmatprep.subr.mxu0 %v326_v2 }
  0x38   :  { %230 = vmatpush3.msra.mxu0 %v81_v27 }
  0x39   :  { %231 = vmatprep.subr.mxu0 %v326_v2 }
  0x3a   :  { %232 = vmatpush3.msra.mxu0 %v80_v28 }
  0x3b   :  { %233 = vmatprep.subr.mxu0 %v326_v2 }
  0x3c   :  { %234 = vmatpush3.msra.mxu0 %v79_v29 }
  0x9a   :  { %v47_v32 = vpop.permute.xlu0 %46 }
  0x9b   :  { %v65_v33 = vpop.permute.xlu1 %64  ;;  %vm48_vm4 = vcmp.eq.s32.totalorder %v47_v32, %v40_v31 }
  0x9c   :  { %vm66_vm5 = vcmp.eq.s32.totalorder %v65_v33, %v40_v31  ;;  %v182_v36 = vsel %vm48_vm4, 1.0, %v326_v2 }
  0x9d   :  { %v184_v39 = vsel %vm66_vm5, 1.0, %v326_v2 }
  0x9f   :  { %v56_v34 = vpop.permute.xlu0 %55 }
  0xa0   :  { %v74_v35 = vpop.permute.xlu1 %73  ;;  %vm57_vm6 = vcmp.eq.s32.totalorder %v56_v34, %v40_v31 }
  0xa1   :  { %vm75_vm7 = vcmp.eq.s32.totalorder %v74_v35, %v40_v31  ;;  %v183_v37 = vsel %vm57_vm6, 1.0, %v326_v2 }
  0xa2   :  { %v60_v38 = vadd.f32 %v183_v37, %v182_v36  ;;  %v185_v40 = vsel %vm75_vm7, 1.0, %v326_v2 }
  0xa4   :  { %v69_v41 = vadd.f32 %v184_v39, %v60_v38 }
  0xa6   :  { %v78_v42 = vadd.f32 %v185_v40, %v69_v41 }
  0xa8   :  { %236 = vmatmul.mubr.f32.vlgmr.msra.gmra.mxu0 %v78_v42 }
 0x168   :  { %v161_v43 = vpop.f32.mrf.mxu0 }
 0x169   :  { %165 = vst [vmem:[#allocation7] sm:$0xf] %v161_v43 }
 0x16a   :  { %v237_v44 = vpop.f32.mrf.mxu0 }
 0x16b   :  { %305 = shalt.err (!%p302_p0)
}
 0x16c   :  { %175 = dma.vmem_to_hbm [thread:$0]  %s173_s1, 64, %s390_s2, [#allocation4]  }
 0x16d   :  { %318 = dma.done.wait [#allocation4], 64  }
 0x16e   :  { %319 = vsyncadd [#allocation4], 4294967232 }
 0x16f   :  { %179 = vsyncpa [#allocation3], 1 }
 0x170   :  { %180 = vsyncpa [#allocation6], 1 }
 0x171   :  { %181 = vsyncpa [#allocation4], 1 }

</bundles_post_ra>
